<compile_context>
chip_gen: v7x
topology: tpu7x:2x2x1
jax: 0.10.0
libtpu: 0.0.40
codegen_flags: <defaults>
</compile_context>

<pallas_src>
import jax
import jax.numpy as jnp
from jax import lax
from jax.experimental import pallas as pl
from jax.experimental.pallas import tpu as pltpu

EPS = 1e-5


# ----------------------------------------------------------------------------
# Kernel 1: per-channel sum / sum-of-squares (BatchNorm batch statistics),
# lane-dense when 128 % C == 0.
# ----------------------------------------------------------------------------
def _stats_kernel(x_ref, sum_ref, sq_ref):
    @pl.when(pl.program_id(0) == 0)
    def _init():
        sum_ref[...] = jnp.zeros_like(sum_ref)
        sq_ref[...] = jnp.zeros_like(sq_ref)

    xv = x_ref[...]
    sum_ref[...] += jnp.sum(xv, axis=0, keepdims=True)
    sq_ref[...] += jnp.sum(xv * xv, axis=0, keepdims=True)


def _pick_row_tile(total, desired):
    """Largest divisor of `total` that is <= desired and TPU-sublane friendly."""
    if total <= desired:
        return total
    for t in range(desired, 0, -1):
        if total % t == 0 and (t % 8 == 0 or t == total):
            return t
    return total


def channel_stats(x2d, *, desired_tile=4096):
    """x2d: (S, C) f32 -> (mean, biased_var), each (1, C) f32."""
    S, C = x2d.shape
    x2d = x2d.astype(jnp.float32)
    if (S * C) % 128 == 0 and 128 % C == 0:
        packed = x2d.reshape(S * C // 128, 128)   # lane-dense view
        fold = 128 // C
    else:
        packed = x2d
        fold = 1
    M, L = packed.shape
    tile = _pick_row_tile(M, desired_tile)

    sums, sqs = pl.pallas_call(
        _stats_kernel,
        out_shape=(jax.ShapeDtypeStruct((1, L), jnp.float32),
                   jax.ShapeDtypeStruct((1, L), jnp.float32)),
        grid_spec=pltpu.PrefetchScalarGridSpec(
            num_scalar_prefetch=0,
            grid=(M // tile,),
            in_specs=[pl.BlockSpec((tile, L), lambda i: (i, 0))],
            out_specs=(pl.BlockSpec((1, L), lambda i: (0, 0)),
                       pl.BlockSpec((1, L), lambda i: (0, 0)))),
        compiler_params=pltpu.CompilerParams(
            dimension_semantics=("arbitrary",)),
    )(packed)

    if fold > 1:
        sums = sums.reshape(fold, C).sum(axis=0, keepdims=True)
        sqs = sqs.reshape(fold, C).sum(axis=0, keepdims=True)
    mean = sums / S
    # NOTE: E[x^2] - E[x]^2 (biased, like BatchNorm normalization); adequate at
    # f32 for the sizes / tolerances used here.
    var = sqs / S - mean * mean
    return mean, var


# ----------------------------------------------------------------------------
# Kernel 2: fused BN(affine) + ReLU + dilated "same" 3D conv (+ bias,
# optional fused residual / 1x1x1 identity conv, optional BN-stat emission).
# Grid = (N, depth-chunks); all KD*KH*KW taps are folded into one contraction.
# ----------------------------------------------------------------------------
def _make_fused_conv_kernel(*, KD, KH, KW, dd, dh, dw, Td, H, W, Hp, Wp,
                            Cin, Cout, Cres, res_mode, emit_stats,
                            packed_out, n_chunks):
    HW = H * W
    M = Td * HW
    span = Td + (KD - 1) * dd
    G = (128 // Cout) if packed_out else 1
    R = (M // G) if packed_out else M

    def kernel(*refs):
        i = 0
        x_ref = refs[i]; i += 1
        scale_ref = refs[i]; i += 1
        shift_ref = refs[i]; i += 1
        w_ref = refs[i]; i += 1
        b_ref = refs[i]; i += 1
        res_ref = None
        if res_mode is not None:
            res_ref = refs[i]; i += 1
        y_ref = refs[i]; i += 1
        if emit_stats:
            sum_ref, sq_ref = refs[i], refs[i + 1]
            i += 2

        # Program ids are read ONCE at the top level of the kernel body (never
        # inside a pl.when branch) -- required for interpret-mode lowering.
        if emit_stats:
            n_id = pl.program_id(0)
            j_id = pl.program_id(1)

            @pl.when(jnp.logical_and(n_id == 0, j_id == 0))
            def _init_stats():
                sum_ref[...] = jnp.zeros_like(sum_ref)
                sq_ref[...] = jnp.zeros_like(sq_ref)

        # Depth slab for this chunk (padded depth coords [j*Td, j*Td + span)).
        if n_chunks == 1:
            slab = x_ref[0]                                  # (span, Hp, Wp, Cin)
        else:
            d0 = pl.multiple_of(pl.program_id(1) * Td, Td)
            slab = x_ref[0, pl.ds(d0, span)]                 # (span, Hp, Wp, Cin)

        # Fused BatchNorm affine + ReLU.  scale/shift already carry the H/W
        # halo mask (zeroed there) and the depth halo of x was padded with
        # -shift/scale per channel, so `act` equals the zero-padded
        # post-BN+ReLU activation PyTorch's Conv3d convolves over.
        act = jnp.maximum(slab * scale_ref[...] + shift_ref[...], 0.0)

        # Fold all KD*KH*KW taps (and the optional 1x1x1 identity conv) into a
        # single bf16 MXU contraction: (Td*H*W, K) @ (K, Cout), f32 accumulate.
        cols = []
        for kd in range(KD):
            for kh in range(KH):
                for kw in range(KW):
                    tap = act[kd * dd:kd * dd + Td,
                              kh * dh:kh * dh + H,
                              kw * dw:kw * dw + W, :]
                    cols.append(tap.reshape(M, Cin).astype(jnp.bfloat16))
        if res_mode == "matmul":
            cols.append(res_ref[0, 0])                       # (M, Cres) bf16
        patches = jnp.concatenate(cols, axis=-1)

        y = jnp.dot(patches, w_ref[...],
                    preferred_element_type=jnp.float32)      # (M, Cout) f32
        y = y + b_ref[...]

        if emit_stats:
            # Next BatchNorm's batch statistics, accumulated over the (fully
            # sequential) grid -- no extra HBM pass over this conv's output.
            sum_ref[...] += jnp.sum(y, axis=0, keepdims=True)
            sq_ref[...] += jnp.sum(y * y, axis=0, keepdims=True)

        if res_mode == "add":
            y = y + res_ref[0, 0]                            # (M, Cout) f32

        if packed_out:
            # Lane-dense store: concatenate G = 128//Cout contiguous row-blocks
            # of y along lanes so the output block is (R, 128) and every store
            # is a full-width vst.  The wrapper undoes the block interleave.
            pieces = [y[g * R:(g + 1) * R, :] for g in range(G)]
            y_ref[...] = jnp.concatenate(pieces, axis=-1).reshape(1, 1, R, 128)
        else:
            y_ref[...] = y.reshape(1, 1, M, Cout)

    return kernel


def _pick_depth_chunk(D, HW, row_target=1024):
    """Largest divisor Td of D with Td*HW <= row_target (MXU M-dim target)."""
    best = 1
    for t in range(1, D + 1):
        if D % t == 0 and t * HW <= row_target:
            best = t
    return best


def fused_bn_relu_conv3d(x, scale, shift, w_folded, bias, *, kernel_size,
                         dilation, residual=None, w_id=None, emit_stats=False):
    """conv3d(relu(scale*x + shift), w) + bias  [+ fused residual path].

    x         : (N, D, H, W, Cin) f32 raw (pre-BN) activation
    scale/shift: (1, Cin) f32 folded BN affine (use 1/0 for no BN)
    w_folded  : (KD*KH*KW*Cin, Cout) bf16 weights, taps folded into the
                contraction dim, row order (kd, kh, kw, cin)
    bias      : (1, Cout) f32
    residual  : optional (N, D, H, W, Cres) f32 added in the epilogue
                (directly if w_id is None, else through a 1x1x1 conv with w_id
                 folded into the same MXU contraction)
    w_id      : optional (Cres, Cout) bf16
    emit_stats: also return per-channel (sum, sum_sq) of the conv output
                (pre-residual) for the next BatchNorm.
    """
    N, D, H, W, Cin = x.shape
    KD, KH, KW = kernel_size
    dd, dh, dw = dilation
    pd = (KD - 1) * dd // 2
    ph = (KH - 1) * dh // 2
    pw = (KW - 1) * dw // 2
    Hp, Wp = H + 2 * ph, W + 2 * pw
    Dp = D + 2 * pd
    Cout = w_folded.shape[-1]
    HW = H * W

    Td = _pick_depth_chunk(D, HW)
    n_chunks = D // Td
    M = Td * HW
    packed_out = (128 % Cout == 0) and (M % (128 // Cout) == 0)
    G = 128 // Cout if packed_out else 1
    R = M // G if packed_out else M

    x = x.astype(jnp.float32)
    scale_v = scale.reshape(Cin).astype(jnp.float32)
    shift_v = shift.reshape(Cin).astype(jnp.float32)

    # Depth halo: pad with the per-channel value that BN+ReLU maps to exactly
    # zero (relu(scale*v + shift) == 0), so depth-halo taps contribute zero --
    # this matches Conv3d zero padding applied to the post-BN+ReLU activation.
    safe_scale = jnp.where(scale_v == 0, 1.0, scale_v)
    dfill = jnp.where(scale_v == 0, 0.0, -shift_v / safe_scale)
    if pd > 0:
        halo = jnp.broadcast_to(dfill.reshape(1, 1, 1, 1, Cin),
                                (N, pd, H, W, Cin))
        x_d = jnp.concatenate([halo, x, halo], axis=1)
    else:
        x_d = x
    # H/W halo: zero-pad; BN+ReLU there is forced to zero by masking
    # the folded scale/shift at those positions.
    x_pad = jnp.pad(x_d, ((0, 0), (0, 0), (ph, ph), (pw, pw), (0, 0)))
    # TODO(synk): for very large volumes, replace the whole-depth-resident x
    # block with a manually double-buffered depth-slab DMA (memory_space=ANY).

    mask_hw = jnp.zeros((Hp, Wp), jnp.float32).at[ph:ph + H, pw:pw + W].set(1.0)
    scale_pos = mask_hw[None, :, :, None] * scale_v.reshape(1, 1, 1, Cin)
    shift_pos = mask_hw[None, :, :, None] * shift_v.reshape(1, 1, 1, Cin)

    res_mode = None
    Cres = Cin
    w_full = w_folded
    res_arg = None
    if residual is not None:
        Cres = residual.shape[-1]
        if w_id is not None:
            res_mode = "matmul"
            # Fold the 1x1x1 identity conv into the same contraction.
            w_full = jnp.concatenate(
                [w_folded, w_id.astype(jnp.bfloat16)], axis=0)
            res_arg = residual.reshape(N, n_chunks, M, Cres).astype(jnp.bfloat16)
        else:
            res_mode = "add"
            res_arg = residual.reshape(N, n_chunks, M, Cres).astype(jnp.float32)

    kernel = _make_fused_conv_kernel(
        KD=KD, KH=KH, KW=KW, dd=dd, dh=dh, dw=dw, Td=Td, H=H, W=W,
        Hp=Hp, Wp=Wp, Cin=Cin, Cout=Cout, Cres=Cres, res_mode=res_mode,
        emit_stats=emit_stats, packed_out=packed_out, n_chunks=n_chunks)

    in_specs = [
        # Whole padded depth of one batch element; constant index along the
        # chunk axis -> VMEM-resident, x is read from HBM once per conv call.
        pl.BlockSpec((1, Dp, Hp, Wp, Cin), lambda n, j: (n, 0, 0, 0, 0)),
        pl.BlockSpec((1, Hp, Wp, Cin), lambda n, j: (0, 0, 0, 0)),
        pl.BlockSpec((1, Hp, Wp, Cin), lambda n, j: (0, 0, 0, 0)),
        pl.BlockSpec(w_full.shape, lambda n, j: (0, 0)),
        pl.BlockSpec((1, Cout), lambda n, j: (0, 0)),
    ]
    args = [x_pad, scale_pos, shift_pos, w_full,
            bias.reshape(1, Cout).astype(jnp.float32)]
    if res_mode is not None:
        in_specs.append(pl.BlockSpec((1, 1, M, Cres), lambda n, j: (n, j, 0, 0)))
        args.append(res_arg)

    if packed_out:
        y_sds = jax.ShapeDtypeStruct((N, n_chunks, R, 128), jnp.float32)
        y_spec = pl.BlockSpec((1, 1, R, 128), lambda n, j: (n, j, 0, 0))
    else:
        y_sds = jax.ShapeDtypeStruct((N, n_chunks, M, Cout), jnp.float32)
        y_spec = pl.BlockSpec((1, 1, M, Cout), lambda n, j: (n, j, 0, 0))

    if emit_stats:
        stat_sds = jax.ShapeDtypeStruct((1, Cout), jnp.float32)
        stat_spec = pl.BlockSpec((1, Cout), lambda n, j: (0, 0))
        out_shape = (y_sds, stat_sds, stat_sds)
        out_specs = (y_spec, stat_spec, stat_spec)
        # Stats accumulate into one resident block -> grid must be sequential.
        # TODO(synk): per-core partial stats to recover v7x megacore here.
        dims = ("arbitrary", "arbitrary")
    else:
        out_shape = y_sds
        out_specs = y_spec
        dims = ("parallel", "parallel")

    outs = pl.pallas_call(
        kernel,
        out_shape=out_shape,
        grid_spec=pltpu.PrefetchScalarGridSpec(
            num_scalar_prefetch=0,
            grid=(N, n_chunks),
            in_specs=in_specs,
            out_specs=out_specs),
        compiler_params=pltpu.CompilerParams(
            dimension_semantics=dims,
            # Stay at <=50% of v7x's 64 MiB/TC; v5e/v6e have ample headroom.
            vmem_limit_bytes=32 * 1024 * 1024),
    )(*args)

    y_out = outs[0] if emit_stats else outs
    if packed_out:
        # Undo the in-kernel lane packing: packed[.., r, g*Cout + c] holds
        # voxel row g*R + r -> transpose the (R, G) block interleave back.
        y = (y_out.reshape(N, n_chunks, R, G, Cout)
             .transpose(0, 1, 3, 2, 4)
             .reshape(N, n_chunks, Td, H, W, Cout)
             .reshape(N, D, H, W, Cout))
    else:
        y = y_out.reshape(N, D, H, W, Cout)

    if emit_stats:
        return y, outs[1], outs[2]
    return y


# ----------------------------------------------------------------------------
# The module
# ----------------------------------------------------------------------------
class HighRes3DNetBlockPallas:
    def __init__(self, in_channels, out_channels, kernel_size=(3, 3, 3),
                 dilation=(1, 1, 1), bn=True, *, key):
        assert all(k % 2 == 1 for k in kernel_size), "odd kernel sizes only"
        self.in_channels = in_channels
        self.out_channels = out_channels
        self.kernel_size = tuple(kernel_size)
        self.dilation = tuple(dilation)
        self.use_bn = bn
        KD, KH, KW = self.kernel_size
        k = jax.random.split(key, 9)
        # Master conv weights stored as (KD, KH, KW, Cin, Cout) f32 ("DHWIO").
        self.w1 = 0.15 * jax.random.normal(
            k[0], (KD, KH, KW, in_channels, out_channels), jnp.float32)
        self.b1 = 0.05 * jax.random.normal(k[1], (out_channels,), jnp.float32)
        self.w2 = 0.15 * jax.random.normal(
            k[2], (KD, KH, KW, out_channels, out_channels), jnp.float32)
        self.b2 = 0.05 * jax.random.normal(k[3], (out_channels,), jnp.float32)
        if in_channels != out_channels:
            self.w_id = 0.3 * jax.random.normal(
                k[4], (in_channels, out_channels), jnp.float32)
        else:
            self.w_id = None
        self.gamma1 = 1.0 + 0.1 * jax.random.normal(k[5], (1, in_channels), jnp.float32)
        self.beta1 = 0.05 * jax.random.normal(k[6], (1, in_channels), jnp.float32)
        self.gamma2 = 1.0 + 0.1 * jax.random.normal(k[7], (1, out_channels), jnp.float32)
        self.beta2 = 0.05 * jax.random.normal(k[8], (1, out_channels), jnp.float32)

    def __call__(self, x):
        # x: (N, D, H, W, Cin) float32
        N, D, H, W, Cin = x.shape
        Cout = self.out_channels
        S = N * D * H * W
        KD, KH, KW = self.kernel_size
        x = x.astype(jnp.float32)

        # bf16 MXU operands (f32 accumulation inside the kernel).
        w1f = self.w1.reshape(KD * KH * KW * Cin, Cout).astype(jnp.bfloat16)
        w2f = self.w2.reshape(KD * KH * KW * Cout, Cout).astype(jnp.bfloat16)
        b1 = self.b1.reshape(1, Cout)
        b2 = self.b2.reshape(1, Cout)
        wid = None if self.w_id is None else self.w_id.astype(jnp.bfloat16)

        # BN1 batch statistics (lane-dense Pallas reduction over x).
        if self.use_bn:
            mean1, var1 = channel_stats(x.reshape(S, Cin))
            scale1 = self.gamma1 / jnp.sqrt(var1 + EPS)
            shift1 = self.beta1 - mean1 * scale1
        else:
            scale1 = jnp.ones((1, Cin), jnp.float32)
            shift1 = jnp.zeros((1, Cin), jnp.float32)

        # BN1 + ReLU + conv1, fused; BN2 statistics come from conv1's epilogue.
        if self.use_bn:
            y1, s2, sq2 = fused_bn_relu_conv3d(
                x, scale1, shift1, w1f, b1,
                kernel_size=self.kernel_size, dilation=self.dilation,
                emit_stats=True)
            mean2 = s2 / S
            var2 = sq2 / S - mean2 * mean2
            scale2 = self.gamma2 / jnp.sqrt(var2 + EPS)
            shift2 = self.beta2 - mean2 * scale2
        else:
            y1 = fused_bn_relu_conv3d(
                x, scale1, shift1, w1f, b1,
                kernel_size=self.kernel_size, dilation=self.dilation,
                emit_stats=False)
            scale2 = jnp.ones((1, Cout), jnp.float32)
            shift2 = jnp.zeros((1, Cout), jnp.float32)

        # BN2 + ReLU + conv2, fused; the residual (1x1x1-conv'd if needed) is
        # folded into the same contraction -- x_id is never materialized.
        out = fused_bn_relu_conv3d(
            y1, scale2, shift2, w2f, b2,
            kernel_size=self.kernel_size, dilation=self.dilation,
            residual=x, w_id=wid, emit_stats=False)
        return out


# ----------------------------------------------------------------------------
# Pure-JAX reference (mirrors the PyTorch forward) for a sanity check
# ----------------------------------------------------------------------------
def reference_forward(block, x):
    ks, dil = block.kernel_size, block.dilation
    pads = tuple(((k - 1) * d) // 2 for k, d in zip(ks, dil))

    def bn(v, gamma, beta):
        mean = v.mean(axis=(0, 1, 2, 3), keepdims=True)
        var = v.var(axis=(0, 1, 2, 3), keepdims=True)       # biased, like BN
        return ((v - mean) / jnp.sqrt(var + EPS)
                * gamma.reshape(1, 1, 1, 1, -1) + beta.reshape(1, 1, 1, 1, -1))

    def conv(v, w, b):
        out = lax.conv_general_dilated(
            v, w, window_strides=(1, 1, 1),
            padding=[(p, p) for p in pads], rhs_dilation=dil,
            dimension_numbers=("NDHWC", "DHWIO", "NDHWC"))
        return out + b.reshape(1, 1, 1, 1, -1)

    x_id = x if block.w_id is None else jnp.einsum("ndhwc,co->ndhwo", x, block.w_id)
    h = x
    if block.use_bn:
        h = bn(h, block.gamma1, block.beta1)
    h = jax.nn.relu(h)
    h = conv(h, block.w1, block.b1)
    if block.use_bn:
        h = bn(h, block.gamma2, block.beta2)
    h = jax.nn.relu(h)
    h = conv(h, block.w2, block.b2)
    return h + x_id


# ----------------------------------------------------------------------------
if __name__ == "__main__":
    key = jax.random.PRNGKey(0)
    k1, k2, k3, k4 = jax.random.split(key, 4)

    # Config 1: channel change -> 1x1x1 identity conv folded into conv2's MXU
    # contraction.
    N, Cin, Cout, D, H, W = 2, 4, 8, 8, 8, 8
    x = jax.random.normal(k1, (N, D, H, W, Cin), jnp.float32)
    blk = HighRes3DNetBlockPallas(Cin, Cout, kernel_size=(3, 3, 3),
                                  dilation=(1, 1, 1), bn=True, key=k2)
    out = jax.block_until_ready(blk(x))
    assert out.shape == (N, D, H, W, Cout)
    assert bool(jnp.all(jnp.isfinite(out)))
    ref = jax.block_until_ready(reference_forward(blk, x))
    assert jnp.allclose(out, ref, rtol=2e-2, atol=2e-2)

    # Config 2: equal channels (plain residual add) with dilation 2.
    N2, C2, D2 = 1, 8, 8
    x2 = jax.random.normal(k3, (N2, D2, D2, D2, C2), jnp.float32)
    blk2 = HighRes3DNetBlockPallas(C2, C2, kernel_size=(3, 3, 3),
                                   dilation=(2, 2, 2), bn=True, key=k4)
    out2 = jax.block_until_ready(blk2(x2))
    assert out2.shape == (N2, D2, D2, D2, C2)
    ref2 = jax.block_until_ready(reference_forward(blk2, x2))
    assert jnp.allclose(out2, ref2, rtol=2e-2, atol=2e-2)

    print("KERNEL_OK")
</pallas_src>

<mosaic_0001>
module attributes {stable_mosaic.version = 11 : i64} {
  func.func @_stats_kernel(%arg0: i32, %arg1: memref<32x128xf32, #tpu.memory_space<vmem>>, %arg2: memref<1x128xf32, #tpu.memory_space<vmem>>, %arg3: memref<1x128xf32, #tpu.memory_space<vmem>>) attributes {dimension_semantics = [#tpu.dimension_semantics<arbitrary>], iteration_bounds = array<i64: 1>, scalar_prefetch = 0 : i64, scratch_operands = 0 : i64, tpu.core_type = #tpu.core_type<tc>, window_params = [{transform_indices = @transform_0, window_bounds = array<i64: 32, 128>}, {pipeline_mode = #tpu.pipeline_mode<synchronous>, transform_indices = @transform_1, window_bounds = array<i64: 1, 128>}, {pipeline_mode = #tpu.pipeline_mode<synchronous>, transform_indices = @transform_2, window_bounds = array<i64: 1, 128>}]} {
    %c0_i32 = arith.constant 0 : i32
    %0 = arith.cmpi eq, %arg0, %c0_i32 : i32
    %1 = arith.extui %0 : i1 to i32
    %c0_i32_0 = arith.constant 0 : i32
    %2 = arith.cmpi ne, %1, %c0_i32_0 : i32
    scf.if %2 {
      %cst_11 = arith.constant 0.000000e+00 : f32
      %15 = vector.broadcast %cst_11 : f32 to vector<1x128xf32>
      %c0_12 = arith.constant 0 : index
      %c0_13 = arith.constant 0 : index
      %16 = vector.load %arg2[%c0_12, %c0_13] : memref<1x128xf32, #tpu.memory_space<vmem>>, vector<1x128xf32>
      tpu.vector_store %arg2[%c0_12, %c0_13], %15 {strides = array<i32>} : memref<1x128xf32, #tpu.memory_space<vmem>>, vector<1x128xf32>,
      %cst_14 = arith.constant 0.000000e+00 : f32
      %17 = vector.broadcast %cst_14 : f32 to vector<1x128xf32>
      %c0_15 = arith.constant 0 : index
      %c0_16 = arith.constant 0 : index
      %18 = vector.load %arg3[%c0_15, %c0_16] : memref<1x128xf32, #tpu.memory_space<vmem>>, vector<1x128xf32>
      tpu.vector_store %arg3[%c0_15, %c0_16], %17 {strides = array<i32>} : memref<1x128xf32, #tpu.memory_space<vmem>>, vector<1x128xf32>,
    } else {
    }
    %c0 = arith.constant 0 : index
    %c0_1 = arith.constant 0 : index
    %3 = vector.load %arg1[%c0, %c0_1] : memref<32x128xf32, #tpu.memory_space<vmem>>, vector<32x128xf32>
    %c0_2 = arith.constant 0 : index
    %c0_3 = arith.constant 0 : index
    %4 = vector.load %arg2[%c0_2, %c0_3] : memref<1x128xf32, #tpu.memory_space<vmem>>, vector<1x128xf32>
    %cst = arith.constant dense<0.000000e+00> : vector<128xf32>
    %5 = vector.multi_reduction <add>, %3, %cst [0] : vector<32x128xf32> to vector<128xf32>
    %6 = vector.shape_cast %5 : vector<128xf32> to vector<1x128xf32>
    %7 = arith.addf %4, %6 : vector<1x128xf32>
    %c0_4 = arith.constant 0 : index
    %c0_5 = arith.constant 0 : index
    %8 = vector.load %arg2[%c0_4, %c0_5] : memref<1x128xf32, #tpu.memory_space<vmem>>, vector<1x128xf32>
    tpu.vector_store %arg2[%c0_4, %c0_5], %7 {strides = array<i32>} : memref<1x128xf32, #tpu.memory_space<vmem>>, vector<1x128xf32>,
    %c0_6 = arith.constant 0 : index
    %c0_7 = arith.constant 0 : index
    %9 = vector.load %arg3[%c0_6, %c0_7] : memref<1x128xf32, #tpu.memory_space<vmem>>, vector<1x128xf32>
    %10 = arith.mulf %3, %3 : vector<32x128xf32>
    %cst_8 = arith.constant dense<0.000000e+00> : vector<128xf32>
    %11 = vector.multi_reduction <add>, %10, %cst_8 [0] : vector<32x128xf32> to vector<128xf32>
    %12 = vector.shape_cast %11 : vector<128xf32> to vector<1x128xf32>
    %13 = arith.addf %9, %12 : vector<1x128xf32>
    %c0_9 = arith.constant 0 : index
    %c0_10 = arith.constant 0 : index
    %14 = vector.load %arg3[%c0_9, %c0_10] : memref<1x128xf32, #tpu.memory_space<vmem>>, vector<1x128xf32>
    tpu.vector_store %arg3[%c0_9, %c0_10], %13 {strides = array<i32>} : memref<1x128xf32, #tpu.memory_space<vmem>>, vector<1x128xf32>,
    return
  }
  func.func @transform_0(%arg0: i32) -> (i32, i32) {
    %c0_i32 = arith.constant 0 : i32
    %c0_i32_0 = arith.constant 0 : i32
    return %arg0, %c0_i32 : i32, i32
  }
  func.func @transform_1(%arg0: i32) -> (i32, i32) {
    %c0_i32 = arith.constant 0 : i32
    %c0_i32_0 = arith.constant 0 : i32
    %c0_i32_1 = arith.constant 0 : i32
    return %c0_i32, %c0_i32_0 : i32, i32
  }
  func.func @transform_2(%arg0: i32) -> (i32, i32) {
    %c0_i32 = arith.constant 0 : i32
    %c0_i32_0 = arith.constant 0 : i32
    %c0_i32_1 = arith.constant 0 : i32
    return %c0_i32, %c0_i32_0 : i32, i32
  }
}

</mosaic_0001>

<bundles_post_ra>
// kernel: tpu_custom_call.1
= control target key start
LH: loop header
LB: loop body
LE: loop exit
PB: predicated region body
PF: predicated region fallthrough
CT: control target
= control target key end

     0   :  { %8 = vsyncpa [#allocation3], 0  ;;  %s236_s0 = inlined_call_operand.hbm [shape: f32[32,128], index: 0, kind: input, shape index: {}]   ;;  %s237_s1 = inlined_call_operand.hbm [shape: f32[1,128], index: 1, kind: output, shape index: {0}]   ;;  %s238_s2 = inlined_call_operand.hbm [shape: f32[1,128], index: 2, kind: output, shape index: {1}]  }
   0x1   :  { %9 = vsyncpa [#allocation4], 0 }
   0x2   :  { %10 = vsyncpa [#allocation7], 0  ;;  %s171_s9 = smov [#allocation2]   ;;  %s99_s13 = scalar_lea.hbm %s236_s0, 512 }
   0x3   :  { %s16_s10 = sshll.u32 %s171_s9, 4  ;;  %p100_p0 = scmp.ne.s32.totalorder %s236_s0, %s99_s13  ;;  %s17_s10 = int_to_ptr.vmem [resolvable:$true] %s16_s10 }
   0x4   :  { %p103_p1 = scmp.lt.u32.totalorder %s99_s13, %s236_s0 }
   0x6   :  { %p105_p2 = pnand %p103_p1, %p100_p0 }
   0x8   :  { %108 = shalt.err (!%p105_p2)
}
   0x9   :  { %s109_s18 = scalar_lea.vmem %s17_s10, 512  ;;  %p114_p4 = scmp.lt.s32.totalorder %s17_s10, %s17_s10 }
   0xa   :  { %p110_p3 = scmp.ne.s32.totalorder %s17_s10, %s109_s18  ;;  %p115_p5 = scmp.lt.s32.totalorder %s109_s18, %s109_s18 }
   0xc   :  { %p116_p6 = por %p115_p5, %p114_p4 }
   0xe   :  { %p117_p7 = pnand %p116_p6, %p110_p3 }
  0x10   :  { %120 = shalt.err (!%p117_p7)
}
  0x11   :  { %s172_s19 = smov 128   ;;  %s173_s20 = smov 8  }
  0x12   :  { %22 = dma.hbm_to_vmem [thread:$0]  %s236_s0, 512, %s17_s10, [#allocation3], %s172_s19, %s172_s19, %s173_s20  }
  0x13   :  { %165 = dma.done.wait [#allocation3], 512  }
  0x14   :  { %166 = vsyncadd [#allocation3], 4294966784  ;;  %v174_v0 = vmov 0.0   ;;  %v32_v1 = vld [vmem:[#allocation2] sm:$0xff]  ;;  %v33_v2 = vld [vmem:[#allocation2 + $0x8] sm:$0xff]  ;;  %s175_s0 = smov [#allocation5]  }
  0x15   :  { %30 = vst [vmem:[#allocation5] sm:$0x1] %v174_v0  ;;  %31 = vst [vmem:[#allocation6] sm:$0x1] %v174_v0  ;;  %v34_v3 = vld [vmem:[#allocation2 + $0x10] sm:$0xff]  ;;  %v35_v4 = vld [vmem:[#allocation2 + $0x18] sm:$0xff]  ;;  %v37_v5 = vadd.f32 %v33_v2, %v32_v1  ;;  %v49_v6 = vmul.f32 %v32_v1, %v32_v1  ;;  %v50_v7 = vmul.f32 %v33_v2, %v33_v2 }
  0x16   :  { %v51_v8 = vmul.f32 %v34_v3, %v34_v3  ;;  %v52_v10 = vmul.f32 %v35_v4, %v35_v4  ;;  %s70_s23 = sshll.u32 %s175_s0, 4  ;;  %s176_s24 = smov [#allocation6]   ;;  %s71_s23 = int_to_ptr.vmem [resolvable:$true] %s70_s23 }
  0x17   :  { %v38_v9 = vadd.f32 %v37_v5, %v34_v3  ;;  %v53_v11 = vadd.f32 %v50_v7, %v49_v6  ;;  %s80_s25 = sshll.u32 %s176_s24, 4  ;;  %s121_s26 = scalar_lea.vmem %s71_s23, 16  ;;  %s204_s25 = int_to_ptr.vmem [resolvable:$true] %s80_s25 }
  0x18   :  { %p122_p8 = scmp.ne.s32.totalorder %s71_s23, %s121_s26  ;;  %s125_s27 = scalar_lea.vmem %s71_s23, 32 }
  0x19   :  { %v39_v12 = vadd.f32 %v38_v9, %v35_v4  ;;  %v54_v13 = vadd.f32 %v53_v11, %v51_v8  ;;  %p126_p9 = scmp.lt.s32.totalorder %s71_s23, %s71_s23  ;;  %p127_p10 = scmp.lt.s32.totalorder %s125_s27, %s121_s26 }
  0x1b   :  { %v40_v14 = vrot.slane %v39_v12, 4  ;;  %v55_v15 = vadd.f32 %v54_v13, %v52_v10  ;;  %p128_p11 = por %p127_p10, %p126_p9 }
  0x1c   :  { %v36_v24 = vld [vmem:[#allocation5] sm:$0x1]  ;;  %v48_v27 = vld [vmem:[#allocation6] sm:$0x1] }
  0x1d   :  { %v41_v16 = vadd.f32 %v40_v14, %v39_v12  ;;  %v56_v17 = vrot.slane %v55_v15, 4  ;;  %p129_p12 = pnand %p128_p11, %p122_p8 }
  0x1f   :  { %v42_v18 = vrot.slane %v41_v16, 2  ;;  %v57_v19 = vadd.f32 %v56_v17, %v55_v15 }
  0x21   :  { %v43_v20 = vadd.f32 %v42_v18, %v41_v16  ;;  %v58_v21 = vrot.slane %v57_v19, 2 }
  0x23   :  { %v44_v22 = vrot.slane %v43_v20, 1  ;;  %v59_v23 = vadd.f32 %v58_v21, %v57_v19 }
  0x25   :  { %v45_v25 = vadd.f32 %v44_v22, %v43_v20  ;;  %v60_v26 = vrot.slane %v59_v23, 1 }
  0x27   :  { %v46_v28 = vadd.f32 %v45_v25, %v36_v24  ;;  %v61_v29 = vadd.f32 %v60_v26, %v59_v23 }
  0x29   :  { %47 = vst [vmem:[#allocation5] sm:$0x1] %v46_v28  ;;  %v62_v30 = vadd.f32 %v61_v29, %v48_v27 }
  0x2a   :  { %132 = shalt.err (!%p129_p12)
}
  0x2b   :  { %s133_s30 = scalar_lea.hbm %s237_s1, 16 }
  0x2c   :  { %p134_p13 = scmp.ne.s32.totalorder %s237_s1, %s133_s30  ;;  %p137_p0 = scmp.lt.u32.totalorder %s133_s30, %s237_s1 }
  0x2e   :  { %p139_p1 = pnand %p137_p0, %p134_p13 }
  0x30   :  { %142 = shalt.err (!%p139_p1)
}
  0x31   :  { %73 = dma.vmem_to_hbm [thread:$0]  %s71_s23, 16, %s237_s1, [#allocation4]   ;;  %63 = vst [vmem:[#allocation6] sm:$0x1] %v62_v30 }
  0x32   :  { %s143_s9 = scalar_lea.vmem %s204_s25, 16  ;;  %s147_s10 = scalar_lea.vmem %s204_s25, 32 }
  0x33   :  { %p144_p2 = scmp.ne.s32.totalorder %s204_s25, %s143_s9  ;;  %p148_p3 = scmp.lt.s32.totalorder %s204_s25, %s204_s25 }
  0x34   :  { %p149_p4 = scmp.lt.s32.totalorder %s147_s10, %s143_s9 }
  0x36   :  { %p150_p5 = por %p149_p4, %p148_p3 }
  0x38   :  { %p151_p6 = pnand %p150_p5, %p144_p2 }
  0x3a   :  { %154 = shalt.err (!%p151_p6)
}
  0x3b   :  { %s155_s13 = scalar_lea.hbm %s238_s2, 16 }
  0x3c   :  { %p156_p7 = scmp.ne.s32.totalorder %s238_s2, %s155_s13  ;;  %p159_p8 = scmp.lt.u32.totalorder %s155_s13, %s238_s2 }
  0x3e   :  { %p161_p9 = pnand %p159_p8, %p156_p7 }
  0x40   :  { %164 = shalt.err (!%p161_p9)
}
  0x41   :  { %83 = dma.vmem_to_hbm [thread:$0]  %s204_s25, 16, %s238_s2, [#allocation7]  }
  0x42   :  { %167 = dma.done.wait [#allocation4], 16  }
  0x43   :  { %168 = vsyncadd [#allocation4], 4294967280 }
  0x44   :  { %169 = dma.done.wait [#allocation7], 16  }
  0x45   :  { %170 = vsyncadd [#allocation7], 4294967280 }
  0x46   :  { %90 = vsyncpa [#allocation3], 1 }
  0x47   :  { %91 = vsyncpa [#allocation4], 1 }
  0x48   :  { %92 = vsyncpa [#allocation7], 1 }

</bundles_post_ra>
